<compile_context>
chip_gen: v7x
topology: tpu7x:2x2x1
jax: 0.10.0
libtpu: 0.0.40
codegen_flags: <defaults>
</compile_context>

<pallas_src>
import functools
import math

import jax
import jax.numpy as jnp
from jax.experimental import pallas as pl
from jax.experimental.pallas import tpu as pltpu


def _conv_bn_silu_kernel(xa_ref, xb_ref, w_ref, scale_ref, shift_ref, o_ref,
                         *, K, TH, W16):
    """One (batch, row-tile, cout-tile) grid step.

    xa_ref:    (1, TH,  W16, K*Cin)   bf16  main row window (kw pre-flattened into lanes)
    xb_ref:    (1, K-1, W16, K*Cin)   bf16  halo rows just below the main window
    w_ref:     (K*K*Cin, TCO)         bf16  fused weights (kh major, kw, ci minor)
    scale_ref: (1, TCO)               f32   folded BN scale = gamma / sqrt(var + eps)
    shift_ref: (1, TCO)               f32   folded BN shift = beta - mean * scale
    o_ref:     (1, TH, W16, TCO)      bf16  output tile
    """
    KCin = xa_ref.shape[-1]
    TCO = w_ref.shape[-1]

    xa = xa_ref[0]                                   # (TH,   W16, KCin)
    xb = xb_ref[0]                                   # (K-1,  W16, KCin)
    # Leading-axis concat (non-tiled axis): builds the (TH+K-1)-row window in VMEM.
    win = jnp.concatenate([xa, xb], axis=0)          # (TH+K-1, W16, KCin)

    # Fuse all K row taps into one MXU matmul: row slices along the major axis are
    # free views, the reshape is free because W16 is a multiple of 16, and the lane
    # concat makes the contraction K*K*Cin deep -> single result drain.
    lhs = jnp.concatenate(
        [win[kh:kh + TH].reshape(TH * W16, KCin) for kh in range(K)], axis=-1)
    acc = jnp.dot(lhs, w_ref[...], preferred_element_type=jnp.float32)  # (TH*W16, TCO)

    # Folded BatchNorm (eval mode) + SiLU(x) = x * sigmoid(x).  Math in f32
    # (v5e-safe), store bf16 to halve writeback of the lane-padded Cout block.
    y = acc * scale_ref[...] + shift_ref[...]
    y = y * jax.nn.sigmoid(y)
    o_ref[...] = y.reshape(1, TH, W16, TCO).astype(o_ref.dtype)


def _choose_row_tile(H, W, halo, target_rows=1024):
    """Rows per output tile: ~target_rows spatial positions per MXU matmul,
    rounded to a multiple of lcm(8, halo) so main and halo blocks index exactly."""
    unit = 8 * halo // math.gcd(8, halo)
    th = max(1, target_rows // max(W, 1))
    th = max(unit, (th // unit) * unit)
    th_cap = ((H + unit - 1) // unit) * unit
    return min(th, th_cap)


def conv_bn_silu(x_nchw, w_hwio, bn_gamma, bn_beta, bn_mean, bn_var,
                 eps=1e-5, target_rows=1024):
    """Forward of `Conv` (kernel_size=K odd, stride=1, padding=autopad, g=1, d=1,
    act=SiLU) with eval-mode BatchNorm folded in.

    x_nchw: (N, Cin, H, W) float32;  w_hwio: (K, K, Cin, Cout) float32;
    BN params: (Cout,) each (running stats)."""
    N, Cin, H, W = x_nchw.shape
    K = int(w_hwio.shape[0])
    Cout = int(w_hwio.shape[3])
    assert w_hwio.shape[1] == K and w_hwio.shape[2] == Cin
    # TODO(synk): stride>1, groups>1, dilation>1, even and 1x1 kernels not implemented.
    assert K % 2 == 1 and K >= 3, "only odd kernel sizes >= 3 are handled"
    pad = K // 2
    halo = K - 1

    TH = _choose_row_tile(H, W, halo, target_rows)
    nH = -(-H // TH)
    assert TH % halo == 0
    hs = TH // halo                      # halo block stride, in halo-block units

    W16 = ((W + 15) // 16) * 16          # bf16 sublane-aligned width
    KCin = K * Cin
    KKCin = K * KCin
    Cout_p = ((Cout + 127) // 128) * 128
    if Cout_p <= 256:
        TCO = Cout_p
    elif Cout_p % 256 == 0:
        TCO = 256
    else:
        TCO = 128
    nCO = Cout_p // TCO

    rows_total = nH * TH + halo          # >= H + 2*pad; extra rows are zeros

    # ---- wrapper-side layout plumbing (one fused XLA pass over the input) ----
    x_nhwc = jnp.transpose(x_nchw, (0, 2, 3, 1)).astype(jnp.bfloat16)
    x_pad = jnp.pad(x_nhwc, ((0, 0), (pad, pad), (pad, pad), (0, 0)))
    # W-direction im2col: lane index = kw*Cin + ci (keeps the MXU LHS lane-packed
    # for small Cin).  No row-window stack: halos are handled by the second BlockSpec.
    xw = jnp.concatenate([x_pad[:, :, kw:kw + W, :] for kw in range(K)], axis=-1)
    xw = jnp.pad(xw, ((0, 0),
                      (0, rows_total - (H + 2 * pad)),
                      (0, W16 - W),
                      (0, 0)))           # (N, rows_total, W16, KCin)

    # Weights: (K, K, Cin, Cout) -> (K*K*Cin, Cout_p) bf16; contraction index order
    # (kh major, kw, ci minor) matches the kernel's lane-concat order.
    w_f = w_hwio.astype(jnp.bfloat16).reshape(KKCin, Cout)
    w_f = jnp.pad(w_f, ((0, 0), (0, Cout_p - Cout)))

    # Fold BatchNorm (eval mode) into per-channel scale/shift (f32 epilogue).
    scale = bn_gamma.astype(jnp.float32) / jnp.sqrt(bn_var.astype(jnp.float32) + eps)
    shift = bn_beta.astype(jnp.float32) - bn_mean.astype(jnp.float32) * scale
    scale = jnp.pad(scale, (0, Cout_p - Cout)).reshape(1, Cout_p)
    shift = jnp.pad(shift, (0, Cout_p - Cout)).reshape(1, Cout_p)

    kernel = functools.partial(_conv_bn_silu_kernel, K=K, TH=TH, W16=W16)

    cost = pl.CostEstimate(
        flops=2 * N * H * W * K * K * Cin * Cout,
        transcendentals=N * H * W * Cout,
        bytes_accessed=int(xw.size) * 2 + int(w_f.size) * 2
                       + int(scale.size + shift.size) * 4
                       + N * nH * TH * W16 * Cout_p * 2,
    )

    out_p = pl.pallas_call(
        kernel,
        out_shape=jax.ShapeDtypeStruct((N, nH * TH, W16, Cout_p), jnp.bfloat16),
        grid_spec=pltpu.PrefetchScalarGridSpec(
            num_scalar_prefetch=0,
            grid=(N, nH, nCO),
            in_specs=[
                # Main TH-row window of this row tile.
                pl.BlockSpec((1, TH, W16, KCin), lambda n, t, c: (n, t, 0, 0)),
                # (K-1)-row halo just below it: same array, second spec -> overlapping
                # windows become pipelined DMAs, not a materialized HBM copy.
                pl.BlockSpec((1, halo, W16, KCin),
                             lambda n, t, c: (n, (t + 1) * hs, 0, 0)),
                pl.BlockSpec((KKCin, TCO), lambda n, t, c: (0, c)),
                pl.BlockSpec((1, TCO), lambda n, t, c: (0, c)),
                pl.BlockSpec((1, TCO), lambda n, t, c: (0, c)),
            ],
            out_specs=pl.BlockSpec((1, TH, W16, TCO), lambda n, t, c: (n, t, 0, c)),
        ),
        compiler_params=pltpu.CompilerParams(
            dimension_semantics=("parallel", "parallel", "parallel"),
            vmem_limit_bytes=48 * 1024 * 1024,   # headroom on v7x's 64 MiB/core
        ),
        cost_estimate=cost,
    )(xw, xw, w_f, scale, shift)

    # Drop H/W/Cout padding, back to f32 NCHW (module semantics).
    out = out_p[:, :H, :W, :Cout].astype(jnp.float32)
    return jnp.transpose(out, (0, 3, 1, 2))


def _reference(x_nchw, w_hwio, bn_gamma, bn_beta, bn_mean, bn_var, eps=1e-5):
    """Same math, same bf16-in / f32-accumulate precision, via XLA conv."""
    x = jnp.transpose(x_nchw, (0, 2, 3, 1)).astype(jnp.bfloat16)
    y = jax.lax.conv_general_dilated(
        x, w_hwio.astype(jnp.bfloat16), window_strides=(1, 1), padding="SAME",
        dimension_numbers=("NHWC", "HWIO", "NHWC"),
        preferred_element_type=jnp.float32)
    scale = bn_gamma / jnp.sqrt(bn_var + eps)
    y = y * scale + (bn_beta - bn_mean * scale)
    y = y * jax.nn.sigmoid(y)
    return jnp.transpose(y, (0, 3, 1, 2))


def _run_case(key, N, Cin, H, W, K, Cout):
    kx, kw_key = jax.random.split(key)
    x = jax.random.normal(kx, (N, Cin, H, W), dtype=jnp.float32)
    fan_in = Cin * K * K
    w = jax.random.normal(kw_key, (K, K, Cin, Cout), dtype=jnp.float32) / fan_in ** 0.5
    # BatchNorm2d default init (eval mode): gamma=1, beta=0, mean=0, var=1.
    gamma = jnp.ones((Cout,), jnp.float32)
    beta = jnp.zeros((Cout,), jnp.float32)
    rmean = jnp.zeros((Cout,), jnp.float32)
    rvar = jnp.ones((Cout,), jnp.float32)

    out = conv_bn_silu(x, w, gamma, beta, rmean, rvar)
    out = jax.block_until_ready(out)
    ref = _reference(x, w, gamma, beta, rmean, rvar)

    assert out.shape == (N, Cout, H, W), out.shape
    max_err = float(jnp.max(jnp.abs(out - ref)))
    assert jnp.allclose(out, ref, atol=3e-2, rtol=3e-2), f"mismatch vs reference: {max_err}"


if __name__ == "__main__":
    key = jax.random.PRNGKey(0)
    k1, k2 = jax.random.split(key)
    # Module config: Conv(c_in=4, c_out=8, kernel_size=3, stride=1) -> autopad=1.
    _run_case(k1, N=2, Cin=4, H=16, W=16, K=3, Cout=8)
    # Awkward (non-aligned) spatial dims: exercises the ragged-H / padded-W path.
    _run_case(k2, N=1, Cin=3, H=13, W=10, K=3, Cout=5)
    print("KERNEL_OK")
</pallas_src>

<mosaic_0001>
module attributes {stable_mosaic.version = 11 : i64} {
  func.func @_conv_bn_silu_kernel(%arg0: i32, %arg1: i32, %arg2: i32, %arg3: memref<1x16x16x12xbf16, #tpu.memory_space<vmem>>, %arg4: memref<1x2x16x12xbf16, #tpu.memory_space<vmem>>, %arg5: memref<36x128xbf16, #tpu.memory_space<vmem>>, %arg6: memref<1x128xf32, #tpu.memory_space<vmem>>, %arg7: memref<1x128xf32, #tpu.memory_space<vmem>>, %arg8: memref<1x16x16x128xbf16, #tpu.memory_space<vmem>>) attributes {dimension_semantics = [#tpu.dimension_semantics<parallel>, #tpu.dimension_semantics<parallel>, #tpu.dimension_semantics<parallel>], iteration_bounds = array<i64: 2, 1, 1>, scalar_prefetch = 0 : i64, scratch_operands = 0 : i64, tpu.core_type = #tpu.core_type<tc>, window_params = [{transform_indices = @transform_0, window_bounds = array<i64: 1, 16, 16, 12>}, {transform_indices = @transform_1, window_bounds = array<i64: 1, 2, 16, 12>}, {transform_indices = @transform_2, window_bounds = array<i64: 36, 128>}, {transform_indices = @transform_3, window_bounds = array<i64: 1, 128>}, {transform_indices = @transform_4, window_bounds = array<i64: 1, 128>}, {transform_indices = @transform_5, window_bounds = array<i64: 1, 16, 16, 128>}]} {
    %c0 = arith.constant 0 : index
    %c0_0 = arith.constant 0 : index
    %c0_1 = arith.constant 0 : index
    %c0_2 = arith.constant 0 : index
    %0 = vector.load %arg3[%c0, %c0_0, %c0_1, %c0_2] : memref<1x16x16x12xbf16, #tpu.memory_space<vmem>>, vector<1x16x16x12xbf16>
    %1 = vector.shape_cast %0 : vector<1x16x16x12xbf16> to vector<16x16x12xbf16>
    %c0_3 = arith.constant 0 : index
    %c0_4 = arith.constant 0 : index
    %c0_5 = arith.constant 0 : index
    %c0_6 = arith.constant 0 : index
    %2 = vector.load %arg4[%c0_3, %c0_4, %c0_5, %c0_6] : memref<1x2x16x12xbf16, #tpu.memory_space<vmem>>, vector<1x2x16x12xbf16>
    %3 = vector.shape_cast %2 : vector<1x2x16x12xbf16> to vector<2x16x12xbf16>
    %4 = tpu.concatenate %1, %3 in 0 : vector<16x16x12xbf16>, vector<2x16x12xbf16> -> vector<18x16x12xbf16>
    %5 = vector.extract_strided_slice %4 {offsets = [0, 0, 0], sizes = [16, 16, 12], strides = [1, 1, 1]} : vector<18x16x12xbf16> to vector<16x16x12xbf16>
    %6 = vector.shape_cast %5 : vector<16x16x12xbf16> to vector<256x12xbf16>
    %7 = vector.extract_strided_slice %4 {offsets = [1, 0, 0], sizes = [16, 16, 12], strides = [1, 1, 1]} : vector<18x16x12xbf16> to vector<16x16x12xbf16>
    %8 = vector.shape_cast %7 : vector<16x16x12xbf16> to vector<256x12xbf16>
    %9 = vector.extract_strided_slice %4 {offsets = [2, 0, 0], sizes = [16, 16, 12], strides = [1, 1, 1]} : vector<18x16x12xbf16> to vector<16x16x12xbf16>
    %10 = vector.shape_cast %9 : vector<16x16x12xbf16> to vector<256x12xbf16>
    %11 = tpu.concatenate %6, %8, %10 in 1 : vector<256x12xbf16>, vector<256x12xbf16>, vector<256x12xbf16> -> vector<256x36xbf16>
    %c0_7 = arith.constant 0 : index
    %c0_8 = arith.constant 0 : index
    %12 = vector.load %arg5[%c0_7, %c0_8] : memref<36x128xbf16, #tpu.memory_space<vmem>>, vector<36x128xbf16>
    %cst = arith.constant dense<0.000000e+00> : vector<256x128xf32>
    %13 = tpu.matmul %11, %12, %cst {dimension_numbers = #tpu.dot_dimension_numbers<[1], [0], [0], [1], [0, 0, 1, 1], [], []>} : vector<256x36xbf16>, vector<36x128xbf16>, vector<256x128xf32> -> vector<256x128xf32>
    %c0_9 = arith.constant 0 : index
    %c0_10 = arith.constant 0 : index
    %14 = vector.load %arg6[%c0_9, %c0_10] : memref<1x128xf32, #tpu.memory_space<vmem>>, vector<1x128xf32>
    %15 = vector.broadcast %14 : vector<1x128xf32> to vector<256x128xf32>
    %16 = arith.mulf %13, %15 : vector<256x128xf32>
    %c0_11 = arith.constant 0 : index
    %c0_12 = arith.constant 0 : index
    %17 = vector.load %arg7[%c0_11, %c0_12] : memref<1x128xf32, #tpu.memory_space<vmem>>, vector<1x128xf32>
    %18 = vector.broadcast %17 : vector<1x128xf32> to vector<256x128xf32>
    %19 = arith.addf %16, %18 : vector<256x128xf32>
    %20 = arith.negf %19 : vector<256x128xf32>
    %21 = math.exp %20 : vector<256x128xf32>
    %cst_13 = arith.constant 1.000000e+00 : f32
    %22 = vector.broadcast %cst_13 : f32 to vector<256x128xf32>
    %23 = arith.addf %22, %21 : vector<256x128xf32>
    %24 = arith.divf %22, %23 : vector<256x128xf32>
    %25 = arith.mulf %19, %24 : vector<256x128xf32>
    %26 = vector.shape_cast %25 : vector<256x128xf32> to vector<1x16x16x128xf32>
    %27 = arith.truncf %26 : vector<1x16x16x128xf32> to vector<1x16x16x128xbf16>
    %c0_14 = arith.constant 0 : index
    %c0_15 = arith.constant 0 : index
    %c0_16 = arith.constant 0 : index
    %c0_17 = arith.constant 0 : index
    %28 = vector.load %arg8[%c0_14, %c0_15, %c0_16, %c0_17] : memref<1x16x16x128xbf16, #tpu.memory_space<vmem>>, vector<1x16x16x128xbf16>
    tpu.vector_store %arg8[%c0_14, %c0_15, %c0_16, %c0_17], %27 {strides = array<i32>} : memref<1x16x16x128xbf16, #tpu.memory_space<vmem>>, vector<1x16x16x128xbf16>,
    return
  }
  func.func @transform_0(%arg0: i32, %arg1: i32, %arg2: i32) -> (i32, i32, i32, i32) {
    %c0_i32 = arith.constant 0 : i32
    %c0_i32_0 = arith.constant 0 : i32
    %c0_i32_1 = arith.constant 0 : i32
    return %arg0, %arg1, %c0_i32, %c0_i32_0 : i32, i32, i32, i32
  }
  func.func @transform_1(%arg0: i32, %arg1: i32, %arg2: i32) -> (i32, i32, i32, i32) {
    %c1_i32 = arith.constant 1 : i32
    %0 = arith.addi %arg1, %c1_i32 : i32
    %c8_i32 = arith.constant 8 : i32
    %1 = arith.muli %0, %c8_i32 : i32
    %c0_i32 = arith.constant 0 : i32
    %c0_i32_0 = arith.constant 0 : i32
    %c0_i32_1 = arith.constant 0 : i32
    return %arg0, %1, %c0_i32, %c0_i32_0 : i32, i32, i32, i32
  }
  func.func @transform_2(%arg0: i32, %arg1: i32, %arg2: i32) -> (i32, i32) {
    %c0_i32 = arith.constant 0 : i32
    %c0_i32_0 = arith.constant 0 : i32
    return %c0_i32, %arg2 : i32, i32
  }
  func.func @transform_3(%arg0: i32, %arg1: i32, %arg2: i32) -> (i32, i32) {
    %c0_i32 = arith.constant 0 : i32
    %c0_i32_0 = arith.constant 0 : i32
    return %c0_i32, %arg2 : i32, i32
  }
  func.func @transform_4(%arg0: i32, %arg1: i32, %arg2: i32) -> (i32, i32) {
    %c0_i32 = arith.constant 0 : i32
    %c0_i32_0 = arith.constant 0 : i32
    return %c0_i32, %arg2 : i32, i32
  }
  func.func @transform_5(%arg0: i32, %arg1: i32, %arg2: i32) -> (i32, i32, i32, i32) {
    %c0_i32 = arith.constant 0 : i32
    %c0_i32_0 = arith.constant 0 : i32
    return %arg0, %arg1, %c0_i32, %arg2 : i32, i32, i32, i32
  }
}

</mosaic_0001>

<bundles_post_ra>
// kernel: tpu_custom_call.1
= control target key start
LH: loop header
LB: loop body
LE: loop exit
PB: predicated region body
PF: predicated region fallthrough
CT: control target
= control target key end

     0   :  { %10 = vsyncpa [#allocation3], 0  ;;  %s2675_s0 = inlined_call_operand.vmem [shape: bf16[2,18,16,12], index: 0, kind: input, shape index: {}]   ;;  %s2676_s1 = inlined_call_operand.vmem [shape: bf16[2,18,16,12], index: 1, kind: input, shape index: {}]   ;;  %s2677_s2 = inlined_call_operand.vmem [shape: bf16[36,128], index: 2, kind: input, shape index: {}]   ;;  %s2678_s3 = inlined_call_operand.vmem [shape: f32[1,128], index: 3, kind: input, shape index: {}]   ;;  %s2679_s4 = inlined_call_operand.vmem [shape: f32[1,128], index: 4, kind: input, shape index: {}]   ;;  %s2680_s5 = inlined_call_operand.hbm [shape: bf16[2,16,16,128], index: 5, kind: output, shape index: {}]  }
   0x1   :  { %12 = vsyncpa [#allocation3 + $0x1], 0  ;;  %s2146_s18 = smov 0   ;;  %s2148_s19 = smov 0  }
   0x2   :  { %s2150_s20 = smov 0   ;;  %s2152_s21 = smov 0  }
   0x3   :  { %s2154_s22 = smov 0   ;;  %s2156_s23 = smov 0  }
   0x4 LB: > { %s1506_s24 = sadd.s32 4294967295, %s2109_s23   ;;  %s1507_s25 = sadd.s32 4294967294, %s2109_s23   ;;  %s2109_s23 = sphi %s2156_s23, %s18_s23   ;;  %s2105_s22 = sphi %s2154_s22, %s2687_s22   ;;  %s2101_s21 = sphi %s2152_s21, %s2686_s21   ;;  %s2097_s20 = sphi %s2150_s20, %s2685_s20   ;;  %s2093_s19 = sphi %s2148_s19, %s2684_s19   ;;  %s2089_s18 = sphi %s2146_s18, %s2683_s18  }
   0x5   : > { %s37_s26 = sadd.s32 1, %s2105_s22  ;;  %s186_s27 = sadd.s32 1, %s2097_s20 }
   0x6   : > { %p39_p0 = scmp.ge.s32.totalorder %s37_s26, 2  ;;  %p196_p1 = scmp.ne.s32.totalorder %s2097_s20, %s2093_s19 }
   0x7   : > { %p197_p2 = scmp.eq.s32.totalorder %s1506_s24, 1  ;;  %p202_p3 = scmp.ne.s32.totalorder %s2093_s19, %s2089_s18 }
   0x8   : > { %s2689_s26 = smov (%p39_p0, %s37_s26), 0  ;;  %p203_p5 = scmp.eq.s32.totalorder %s1507_s25, 1 }
   0x9   : > { %p2186_p4 = por %p197_p2, %p196_p1  ;;  %s179_s29 = ssub.s32 %s2105_s22, %s2689_s26 }
   0xa   : > { %p1513_p6 = scmp.ge.s32.totalorder %s2109_s23, 1  ;;  %p184_p7 = scmp.eq.s32.totalorder %s179_s29, 0 }
   0xb   : > { %p2193_p8 = por %p203_p5, %p202_p3  ;;  %p282_p9 = scmp.lt.s32.totalorder %s2109_s23, 3 }
   0xc   : > { %s2199_s6 = scalar_select %p184_p7, %s2097_s20, %s186_s27  }
   0xd   : > { %p283_p10 = pnand %p1513_p6, %p282_p9 }
   0xe   : > { %p348_p11 = scmp.lt.s32.totalorder (!%p283_p10), %s2101_s21, 1  ;;  %v1900_v0 = vld [vmem:[%s2677_s2] sm:$0xff] (!%p283_p10)   ;;  %v1901_v1 = vld [vmem:[%s2677_s2 + $0x8] sm:$0xff] (!%p283_p10)   ;;  %v1902_v2 = vld [vmem:[%s2677_s2 + $0x10] ss:$0 sps:$4 sm:$0x33] (!%p283_p10)  }
   0xf   : > { %286 = sbr.rel (%p283_p10) target bundleno = 486 (0x1e6), region = 40  ;;  %1774 = vmatprep.subr.bf16.mxu0 (!%p283_p10), %v1900_v0  ;;  %1812 = vmatprep.subr.bf16.mxu1 (!%p283_p10), %v1900_v0  ;;  %vm715_vm0 = vcmask (!%p283_p10), 1041408   ;;  %s2111_s24 = smov (!%p283_p10), 12   ;;  %vm580_vm1 = vcmask (!%p283_p10), 97280   ;;  %vm629_vm2 = vcmask (!%p283_p10), 195584   ;;  %vm682_vm3 = vcmask (!%p283_p10), 293888  }
  0x10   : > { %1775 = vmatpush3.bf16.msra.mxu0 (!%p283_p10), %v1900_v0  ;;  %1815 = vmatpush3.bf16.msra.mxu1 (!%p283_p10), %v1900_v0  ;;  %v717_v5 = vsel (!%p283_p10), %vm715_vm0, %v1902_v2, 0  ;;  %s2112_s25 = smov (!%p283_p10), 24   ;;  %s339_s13 = sand.u32 (!%p283_p10), 1, %s2093_s19  }
  0x11   : > { %1776 = vmatprep.subr.bf16.mxu0 (!%p283_p10), %v1901_v1  ;;  %1813 = vmatprep.subr.bf16.mxu1 (!%p283_p10), %v1901_v1  ;;  %s2485_s14 = sshll.u32 (!%p283_p10), %s339_s13, 7  ;;  %s1659_s16 = sshll.u32 (!%p283_p10), %s2101_s21, 11 }
  0x12   : > { %s2508_s15 = scalar_lea.vmem (!%p283_p10), [#allocation2], %s2485_s14  ;;  %s2113_s7 = smov (!%p283_p10), [#allocation2]  }
  0x14   : > { %1777 = vmatpush3.bf16.msra.mxu0 (!%p283_p10), %v1901_v1  ;;  %1816 = vmatpush3.bf16.msra.mxu1 (!%p283_p10), %v1901_v1 }
  0x15   : > { %1818 = vmatprep.subr.msk.bf16.mxu0 (!%p283_p10), %vm715_vm0, %v1902_v2  ;;  %1819 = vmatprep.subr.msk.bf16.mxu1 (!%p283_p10), %vm715_vm0, %v1902_v2 }
  0x16   : > { %s2209_s11 = scalar_select %p348_p11, %s2101_s21, 1 }
  0x17   : > { %s2629_s21 = scalar_lea.sflag [#allocation3], %s339_s13 }
  0x18   : > { %s1820_s12 = smul.u32 144, %s2209_s11  ;;  %1779 = vmatpush3.bf16.msra.mxu0 %v717_v5  ;;  %1817 = vmatpush3.bf16.msra.mxu1 %v717_v5 }
  0x1a   : > { %s2218_s17 = scalar_lea.vmem %s2675_s0, %s1820_s12  ;;  %s1626_s27 = sadd.s32 128, %s1820_s12 }
  0x1b   : > { %v2221_v3 = vld [vmem:[%s2218_s17 + $0x10] sm:$0xff]   ;;  %v2224_v4 = vld [vmem:[%s2218_s17 + $0x8] sm:$0xff]   ;;  %v2243_v8 = vld [vmem:[%s2218_s17 + $0x58] sm:$0xff]   ;;  %s2253_s8 = scalar_lea.vmem %s2676_s1, %s1626_s27  ;;  %s2622_s27 = scalar_lea.hbm %s2680_s5, %s1659_s16 }
  0x1c   : > { %513 = vrot.lane.b32.xlu1 %v2221_v3, %s2111_s24  ;;  %v2229_v6 = vld [vmem:[%s2218_s17 + $0x50] sm:$0xff]   ;;  %511 = vrot.lane.b32.xlu0 %v2224_v4, %s2111_s24  ;;  %v2234_v7 = vld [vmem:[%s2218_s17 + $0x48] sm:$0xff]  }
  0x1d   : > { %v2248_v9 = vld [vmem:[%s2218_s17 + $0x18] sm:$0xff]   ;;  %v2262_v10 = vld [vmem:[%s2218_s17 + $0x60] sm:$0xff]   ;;  %v2276_v12 = vld [vmem:[%s2218_s17 + $0x68] sm:$0xff]  }
  0x1e   : > { %v2267_v11 = vld [vmem:[%s2218_s17 + $0x20] sm:$0xff]   ;;  %v2281_v13 = vld [vmem:[%s2218_s17 + $0x28] sm:$0xff]   ;;  %v2290_v14 = vld [vmem:[%s2218_s17 + $0x70] sm:$0xff]  }
  0x1f   : > { %v2295_v15 = vld [vmem:[%s2218_s17 + $0x30] sm:$0xff]   ;;  %v2304_v16 = vld [vmem:[%s2218_s17 + $0x78] sm:$0xff]   ;;  %v1896_v18 = vld [vmem:[%s2253_s8] sm:$0xff]  }
  0x20   : > { %529 = vrot.lane.b32.xlu1 %v2229_v6, %s2111_s24  ;;  %527 = vrot.lane.b32.xlu0 %v2234_v7, %s2111_s24  ;;  %v2309_v17 = vld [vmem:[%s2218_s17 + $0x38] sm:$0xff]   ;;  %v1897_v19 = vld [vmem:[%s2218_s17 + $0x40] sm:$0xff]  }
  0x21   : > { %v1898_v20 = vld [vmem:[%s2253_s8 + $0x8] sm:$0xff]   ;;  %v1899_v24 = vld [vmem:[%s2218_s17] sm:$0xff]   ;;  %s1360_s17 = sshll.u32 %s2508_s15, 4  ;;  %s2035_s8 = sshll.u32 %s2113_s7, 4  ;;  %s2624_s17 = int_to_ptr.vmem [resolvable:$true] %s1360_s17  ;;  %s2036_s8 = int_to_ptr.vmem [resolvable:$false] %s2035_s8 }
  0x22   : > { %s2031_s29 = scalar_lea.vmem %s2624_s17, 2048  ;;  %s2037_s9 = scalar_lea.vmem %s2036_s8, 4096 }
  0x23   : > { %p2032_p12 = scmp.ne.s32.totalorder %s2624_s17, %s2031_s29  ;;  %p2038_p1 = scmp.lt.s32.totalorder %s2624_s17, %s2036_s8 }
  0x24   : > { %564 = vrot.lane.b32.xlu1 %v2229_v6, %s2112_s25  ;;  %548 = vrot.lane.b32.xlu0 %v2221_v3, %s2112_s25  ;;  %p2039_p2 = scmp.lt.s32.totalorder %s2037_s9, %s2031_s29 }
  0x25   : > { %p2033_p13 = pnand %p2032_p12, %p2186_p4 }
  0x26   : > { %p2040_p3 = por %p2039_p2, %p2038_p1 }
  0x27   : > { %p2034_p0 = pneg %p2033_p13 }
  0x28   : > { %566 = vrot.lane.b32.xlu1 %v2243_v8, %s2112_s25  ;;  %550 = vrot.lane.b32.xlu0 %v2248_v9, %s2112_s25 }
  0x29   : > { %p2041_p5 = pnand %p2040_p3, %p2034_p0 }
  0x2c   : > { %531 = vrot.lane.b32.xlu1 %v2243_v8, %s2111_s24  ;;  %515 = vrot.lane.b32.xlu0 %v2248_v9, %s2111_s24 }
  0x30   : > { %533 = vrot.lane.b32.xlu1 %v2262_v10, %s2111_s24  ;;  %517 = vrot.lane.b32.xlu0 %v2267_v11, %s2111_s24 }
  0x34   : > { %568 = vrot.lane.b32.xlu1 %v2262_v10, %s2112_s25  ;;  %552 = vrot.lane.b32.xlu0 %v2267_v11, %s2112_s25 }
  0x38   : > { %570 = vrot.lane.b32.xlu1 %v2276_v12, %s2112_s25  ;;  %554 = vrot.lane.b32.xlu0 %v2281_v13, %s2112_s25 }
  0x3c   : > { %535 = vrot.lane.b32.xlu1 %v2276_v12, %s2111_s24  ;;  %519 = vrot.lane.b32.xlu0 %v2281_v13, %s2111_s24 }
  0x40   : > { %537 = vrot.lane.b32.xlu1 %v2290_v14, %s2111_s24  ;;  %521 = vrot.lane.b32.xlu0 %v2295_v15, %s2111_s24 }
  0x44   : > { %572 = vrot.lane.b32.xlu1 %v2290_v14, %s2112_s25  ;;  %556 = vrot.lane.b32.xlu0 %v2295_v15, %s2112_s25 }
  0x48   : > { %574 = vrot.lane.b32.xlu1 %v2304_v16, %s2112_s25  ;;  %558 = vrot.lane.b32.xlu0 %v2309_v17, %s2112_s25 }
  0x4c   : > { %539 = vrot.lane.b32.xlu1 %v2304_v16, %s2111_s24  ;;  %523 = vrot.lane.b32.xlu0 %v2309_v17, %s2111_s24 }
  0x50   : > { %541 = vrot.lane.b32.xlu1 %v1896_v18, %s2111_s24  ;;  %525 = vrot.lane.b32.xlu0 %v1897_v19, %s2111_s24 }
  0x54   : > { %576 = vrot.lane.b32.xlu1 %v1896_v18, %s2112_s25  ;;  %560 = vrot.lane.b32.xlu0 %v1897_v19, %s2112_s25 }
  0x58   : > { %578 = vrot.lane.b32.xlu1 %v1898_v20, %s2112_s25  ;;  %562 = vrot.lane.b32.xlu0 %v2234_v7, %s2112_s25 }
  0x8e   : > { %v514_v21 = vpop.permute.xlu1 %513  ;;  %v512_v22 = vpop.permute.xlu0 %511 }
  0x8f   : > { %v583_v28 = vsel %vm580_vm1, %v1899_v24, %v512_v22  ;;  %v586_v34 = vsel %vm580_vm1, %v2224_v4, %v514_v21  ;;  %v2395_v24 = vld [vmem:[%s2678_s3] ss:$0 sm:$0xff] }
  0x92   : > { %v530_v23 = vpop.permute.xlu1 %529  ;;  %v528_v25 = vpop.permute.xlu0 %527 }
  0x93   : > { %v607_v26 = vsel %vm580_vm1, %v1897_v19, %v528_v25  ;;  %v610_v32 = vsel %vm580_vm1, %v2234_v7, %v530_v23 }
  0x96   : > { %v565_v27 = vpop.permute.xlu1 %564  ;;  %v549_v29 = vpop.permute.xlu0 %548 }
  0x97   : > { %v647_v30 = vsel %vm629_vm2, %v607_v26, %v565_v27  ;;  %v631_v31 = vsel %vm629_vm2, %v583_v28, %v549_v29 }
  0x98   : > { %1796 = vmatprep.mubr.msk.bf16.mxu1 %vm682_vm3, %v647_v30  ;;  %1780 = vmatprep.mubr.msk.bf16.mxu0 %vm682_vm3, %v631_v31 }
  0x9a   : > { %v567_v33 = vpop.permute.xlu1 %566  ;;  %v551_v36 = vpop.permute.xlu0 %550 }
  0x9b   : > { %v649_v35 = vsel %vm629_vm2, %v610_v32, %v567_v33  ;;  %v633_v37 = vsel %vm629_vm2, %v586_v34, %v551_v36 }
  0x9c   : > { %1797 = vmatmul.mubr.msk.bf16.vlgmr.msra.gmra.mrb[0].mxu1 %vm682_vm3, %v649_v35  ;;  %1781 = vmatmul.mubr.msk.bf16.vlgmr.msra.gmra.mrb[0].mxu0 %vm682_vm3, %v633_v37 }
  0x9e   : > { %v532_v38 = vpop.permute.xlu1 %531  ;;  %v516_v39 = vpop.permute.xlu0 %515 }
  0x9f   : > { %v613_v42 = vsel %vm580_vm1, %v2229_v6, %v532_v38  ;;  %v589_v44 = vsel %vm580_vm1, %v2221_v3, %v516_v39 }
  0xa2   : > { %v534_v40 = vpop.permute.xlu1 %533  ;;  %v518_v41 = vpop.permute.xlu0 %517 }
  0xa3   : > { %v616_v48 = vsel %vm580_vm1, %v2243_v8, %v534_v40  ;;  %v592_v50 = vsel %vm580_vm1, %v2248_v9, %v518_v41 }
  0xa6   : > { %v569_v43 = vpop.permute.xlu1 %568  ;;  %v553_v46 = vpop.permute.xlu0 %552 }
  0xa7   : > { %v651_v45 = vsel %vm629_vm2, %v613_v42, %v569_v43  ;;  %v635_v47 = vsel %vm629_vm2, %v589_v44, %v553_v46 }
  0xa8   : > { %1800 = vmatprep.mubr.msk.bf16.mxu1 %vm682_vm3, %v651_v45  ;;  %1784 = vmatprep.mubr.msk.bf16.mxu0 %vm682_vm3, %v635_v47 }
  0xaa   : > { %v571_v49 = vpop.permute.xlu1 %570  ;;  %v555_v52 = vpop.permute.xlu0 %554 }
  0xab   : > { %v653_v51 = vsel %vm629_vm2, %v616_v48, %v571_v49  ;;  %v637_v53 = vsel %vm629_vm2, %v592_v50, %v555_v52 }
  0xac   : > { %1801 = vmatmul.mubr.msk.bf16.gmra.mrb[4].mxu1 %vm682_vm3, %v653_v51  ;;  %1785 = vmatmul.mubr.msk.bf16.gmra.mrb[4].mxu0 %vm682_vm3, %v637_v53 }
  0xae   : > { %v536_v54 = vpop.permute.xlu1 %535  ;;  %v520_v55 = vpop.permute.xlu0 %519 }
  0xaf   : > { %v619_v58 = vsel %vm580_vm1, %v2262_v10, %v536_v54  ;;  %v595_v60 = vsel %vm580_vm1, %v2267_v11, %v520_v55 }
  0xb2   : > { %v538_v56 = vpop.permute.xlu1 %537  ;;  %v522_v57 = vpop.permute.xlu0 %521 }
  0xb3   : > { %v622_v0 = vsel %vm580_vm1, %v2276_v12, %v538_v56  ;;  %v598_v2 = vsel %vm580_vm1, %v2281_v13, %v522_v57 }
  0xb6   : > { %v573_v59 = vpop.permute.xlu1 %572  ;;  %v557_v62 = vpop.permute.xlu0 %556 }
  0xb7   : > { %v655_v61 = vsel %vm629_vm2, %v619_v58, %v573_v59  ;;  %v639_v63 = vsel %vm629_vm2, %v595_v60, %v557_v62 }
  0xb8   : > { %1804 = vmatprep.mubr.msk.bf16.mxu1 %vm682_vm3, %v655_v61  ;;  %1788 = vmatprep.mubr.msk.bf16.mxu0 %vm682_vm3, %v639_v63 }
  0xba   : > { %v575_v1 = vpop.permute.xlu1 %574  ;;  %v559_v4 = vpop.permute.xlu0 %558 }
  0xbb   : > { %v657_v3 = vsel %vm629_vm2, %v622_v0, %v575_v1  ;;  %v641_v5 = vsel %vm629_vm2, %v598_v2, %v559_v4 }
  0xbc   : > { %1805 = vmatmul.mubr.msk.bf16.gmra.mrb[8].mxu1 %vm682_vm3, %v657_v3  ;;  %1789 = vmatmul.mubr.msk.bf16.gmra.mrb[8].mxu0 %vm682_vm3, %v641_v5 }
  0xbe   : > { %v540_v6 = vpop.permute.xlu1 %539  ;;  %v524_v7 = vpop.permute.xlu0 %523 }
  0xbf   : > { %v625_v10 = vsel %vm580_vm1, %v2290_v14, %v540_v6  ;;  %v601_v12 = vsel %vm580_vm1, %v2295_v15, %v524_v7 }
  0xc2   : > { %v542_v8 = vpop.permute.xlu1 %541  ;;  %v526_v9 = vpop.permute.xlu0 %525 }
  0xc3   : > { %v628_v20 = vsel %vm580_vm1, %v2304_v16, %v542_v8  ;;  %v604_v14 = vsel %vm580_vm1, %v2309_v17, %v526_v9  ;;  %v2400_v16 = vld [vmem:[%s2679_s4] ss:$0 sm:$0xff] }
  0xc6   : > { %v577_v11 = vpop.permute.xlu1 %576  ;;  %v561_v18 = vpop.permute.xlu0 %560 }
  0xc7   : > { %v659_v13 = vsel %vm629_vm2, %v625_v10, %v577_v11  ;;  %v643_v19 = vsel %vm629_vm2, %v601_v12, %v561_v18 }
  0xc8   : > { %1808 = vmatprep.mubr.msk.bf16.mxu1 %vm682_vm3, %v659_v13  ;;  %1792 = vmatprep.mubr.msk.bf16.mxu0 %vm682_vm3, %v643_v19 }
  0xca   : > { %v579_v21 = vpop.permute.xlu1 %578  ;;  %v563_v23 = vpop.permute.xlu0 %562 }
  0xcb   : > { %v661_v22 = vsel %vm629_vm2, %v628_v20, %v579_v21  ;;  %v645_v15 = vsel %vm629_vm2, %v604_v14, %v563_v23 }
  0xcc   : > { %1809 = vmatmul.mubr.msk.bf16.gmra.mrb[12].mxu1 %vm682_vm3, %v661_v22  ;;  %1793 = vmatmul.mubr.msk.bf16.gmra.mrb[12].mxu0 %vm682_vm3, %v645_v15 }
 0x16f   : > { %v1798_v17 = vpop.f32.mrb[0].mxu1  ;;  %v1782_v25 = vpop.f32.mrb[0].mxu0 }
 0x170   : > { %v905_v26 = vmul.f32 %v1798_v17, %v2395_v24  ;;  %v817_v27 = vpop.f32.mrb[1].mxu1  ;;  %v889_v28 = vmul.f32 %v1782_v25, %v2395_v24  ;;  %v753_v29 = vpop.f32.mrb[1].mxu0 }
 0x171   : > { %v903_v30 = vmul.f32 %v2395_v24, %v817_v27  ;;  %v1799_v31 = vpop.f32.mrb[2].mxu1  ;;  %v887_v33 = vmul.f32 %v2395_v24, %v753_v29  ;;  %v1783_v34 = vpop.f32.mrb[2].mxu0 }
 0x172   : > { %v2406_v32 = vadd.f32 %v2400_v16, %v905_v26  ;;  %v906_v35 = vmul.f32 %v1799_v31, %v2395_v24  ;;  %v820_v36 = vpop.f32.mrb[3].mxu1  ;;  %v2411_v37 = vadd.f32 %v2400_v16, %v889_v28  ;;  %v890_v39 = vmul.f32 %v1783_v34, %v2395_v24  ;;  %v756_v40 = vpop.f32.mrb[3].mxu0 }
 0x173   : > { %v2414_v38 = vadd.f32 %v2400_v16, %v903_v30  ;;  %v904_v41 = vmul.f32 %v2395_v24, %v820_v36  ;;  %v2420_v43 = vadd.f32 %v2400_v16, %v887_v33  ;;  %v888_v45 = vmul.f32 %v2395_v24, %v756_v40 }
 0x174   : > { %v1574_v42 = vmul.f32 -1.442695, %v2406_v32  ;;  %v2423_v44 = vadd.f32 %v2400_v16, %v906_v35  ;;  %v1558_v46 = vmul.f32 -1.442695, %v2411_v37  ;;  %v2429_v48 = vadd.f32 %v2400_v16, %v890_v39 }
 0x175   : > { %v1572_v47 = vmul.f32 -1.442695, %v2414_v38  ;;  %v2432_v49 = vadd.f32 %v2400_v16, %v904_v41  ;;  %v1556_v50 = vmul.f32 -1.442695, %v2420_v43  ;;  %v2436_v51 = vadd.f32 %v2400_v16, %v888_v45 }
 0x176   : > { %1903 = vpow2.f32 %v1574_v42  ;;  %v1559_v52 = vmul.f32 -1.442695, %v2429_v48  ;;  %v1575_v53 = vmul.f32 -1.442695, %v2423_v44 }
 0x177   : > { %1905 = vpow2.f32 %v1558_v46  ;;  %v1557_v54 = vmul.f32 -1.442695, %v2436_v51  ;;  %v1573_v55 = vmul.f32 -1.442695, %v2432_v49 }
 0x178   : > { %1907 = vpow2.f32 %v1556_v50 }
 0x179   : > { %1909 = vpow2.f32 %v1572_v47 }
 0x17a   : > { %1911 = vpow2.f32 %v1559_v52 }
 0x17b   : > { %1913 = vpow2.f32 %v1575_v53 }
 0x17c   : > { %1915 = vpow2.f32 %v1557_v54 }
 0x17d   : > { %1917 = vpow2.f32 %v1573_v55 }
 0x17f   : > { %v1802_v56 = vpop.f32.mrb[4].mxu1  ;;  %v1786_v58 = vpop.f32.mrb[4].mxu0 }
 0x180   : > { %v1904_v57 = vpop.eup %1903  ;;  %v909_v59 = vmul.f32 %v1802_v56, %v2395_v24  ;;  %v833_v60 = vpop.f32.mrb[5].mxu1  ;;  %v893_v63 = vmul.f32 %v1786_v58, %v2395_v24 }
 0x181   : > { %v1906_v61 = vpop.eup %1905  ;;  %v1072_v62 = vadd.f32 1.0, %v1904_v57  ;;  %v769_v0 = vpop.f32.mrb[5].mxu0  ;;  %v907_v1 = vmul.f32 %v2395_v24, %v833_v60 }
 0x182   : > { %v1803_v2 = vpop.f32.mrb[6].mxu1  ;;  %v1908_v3 = vpop.eup %1907  ;;  %v1056_v4 = vadd.f32 1.0, %v1906_v61  ;;  %v2446_v5 = vadd.f32 %v2400_v16, %v909_v59  ;;  %v891_v6 = vmul.f32 %v2395_v24, %v769_v0  ;;  %v2450_v11 = vadd.f32 %v2400_v16, %v893_v63 }
 0x183   : > { %v1787_v7 = vpop.f32.mrb[6].mxu0  ;;  %v836_v8 = vpop.f32.mrb[7].mxu1  ;;  %1919 = vrcp.f32 %v1072_v62  ;;  %v1054_v10 = vadd.f32 1.0, %v1908_v3  ;;  %v910_v12 = vmul.f32 %v1803_v2, %v2395_v24  ;;  %v2454_v20 = vadd.f32 %v2400_v16, %v907_v1 }
 0x184   : > { %v1910_v9 = vpop.eup %1909  ;;  %v772_v13 = vpop.f32.mrb[7].mxu0  ;;  %1921 = vrcp.f32 %v1056_v4  ;;  %v1578_v22 = vmul.f32 -1.442695, %v2446_v5  ;;  %v2458_v23 = vadd.f32 %v2400_v16, %v891_v6  ;;  %v1562_v25 = vmul.f32 -1.442695, %v2450_v11 }
 0x185   : > { %v1912_v18 = vpop.eup %1911  ;;  %v1070_v19 = vadd.f32 1.0, %v1910_v9  ;;  %1923 = vrcp.f32 %v1054_v10  ;;  %v894_v26 = vmul.f32 %v1787_v7, %v2395_v24  ;;  %v2463_v29 = vadd.f32 %v2400_v16, %v910_v12 }
 0x186   : > { %v1914_v21 = vpop.eup %1913  ;;  %v1057_v14 = vadd.f32 1.0, %v1912_v18  ;;  %v892_v30 = vmul.f32 %v2395_v24, %v772_v13  ;;  %v908_v34 = vmul.f32 %v2395_v24, %v836_v8  ;;  %v1560_v35 = vmul.f32 -1.442695, %v2458_v23 }
 0x187   : > { %v1916_v15 = vpop.eup %1915  ;;  %1925 = vrcp.f32 %v1070_v19  ;;  %v1073_v17 = vadd.f32 1.0, %v1914_v21  ;;  %v2467_v33 = vadd.f32 %v2400_v16, %v894_v26  ;;  %v1576_v39 = vmul.f32 -1.442695, %v2454_v20 }
 0x188   : > { %v1918_v27 = vpop.eup %1917  ;;  %1927 = vrcp.f32 %v1057_v14  ;;  %v1055_v28 = vadd.f32 1.0, %v1916_v15  ;;  %v2472_v36 = vadd.f32 %v2400_v16, %v892_v30  ;;  %v2476_v40 = vadd.f32 %v2400_v16, %v908_v34 }
 0x189   : > { %1929 = vrcp.f32 %v1073_v17  ;;  %v1071_v31 = vadd.f32 1.0, %v1918_v27  ;;  %v1563_v41 = vmul.f32 -1.442695, %v2467_v33  ;;  %v1579_v42 = vmul.f32 -1.442695, %v2463_v29 }
 0x18a   : > { %1931 = vrcp.f32 %v1055_v28  ;;  %v1561_v46 = vmul.f32 -1.442695, %v2472_v36  ;;  %v1577_v50 = vmul.f32 -1.442695, %v2476_v40 }
 0x18b   : > { %1933 = vrcp.f32 %v1071_v31 }
 0x18c   : > { %1935 = vpow2.f32 %v1562_v25 }
 0x18d   : > { %1937 = vpow2.f32 %v1578_v22  ;;  %v1920_v45 = vpop.eup %1919 }
 0x18e   : > { %1939 = vpow2.f32 %v1560_v35  ;;  %v1922_v47 = vpop.eup %1921  ;;  %v1168_v59 = vmul.f32 %v1920_v45, %v2406_v32 }
 0x18f   : > { %1941 = vpow2.f32 %v1576_v39  ;;  %v1924_v52 = vpop.eup %1923  ;;  %v1806_v53 = vpop.f32.mrb[8].mxu1  ;;  %v1152_v0 = vmul.f32 %v1922_v47, %v2411_v37 }
 0x190   : > { %1943 = vpow2.f32 %v1563_v41  ;;  %v1790_v55 = vpop.f32.mrb[8].mxu0  ;;  %v913_v56 = vmul.f32 %v1806_v53, %v2395_v24  ;;  %v849_v57 = vpop.f32.mrb[9].mxu1  ;;  %v1150_v7 = vmul.f32 %v1924_v52, %v2420_v43 }
 0x191   : > { %v1926_v54 = vpop.eup %1925  ;;  %1945 = vpow2.f32 %v1579_v42  ;;  %v897_v60 = vmul.f32 %v1790_v55, %v2395_v24  ;;  %v785_v61 = vpop.f32.mrb[9].mxu0  ;;  %v911_v14 = vmul.f32 %v2395_v24, %v849_v57 }
 0x192   : > { %v1928_v58 = vpop.eup %1927  ;;  %1947 = vpow2.f32 %v1561_v46  ;;  %v1807_v62 = vpop.f32.mrb[10].mxu1  ;;  %v2493_v2 = vadd.f32 %v2400_v16, %v913_v56  ;;  %v895_v9 = vmul.f32 %v2395_v24, %v785_v61 }
 0x193   : > { %v1930_v63 = vpop.eup %1929  ;;  %v1153_v1 = vmul.f32 %v1928_v58, %v2429_v48  ;;  %1949 = vpow2.f32 %v1577_v50  ;;  %v1791_v3 = vpop.f32.mrb[10].mxu0  ;;  %v2498_v8 = vadd.f32 %v2400_v16, %v897_v60  ;;  %v1166_v48 = vmul.f32 %v1926_v54, %v2414_v38 }
 0x194   : > { %v852_v4 = vpop.f32.mrb[11].mxu1  ;;  %v1932_v6 = vpop.eup %1931  ;;  %v1169_v32 = vmul.f32 %v1930_v63, %v2423_v44  ;;  %v1582_v18 = vmul.f32 -1.442695, %v2493_v2  ;;  %v2514_v26 = vadd.f32 %v2400_v16, %v895_v9  ;;  %v914_v30 = vmul.f32 %v1807_v62, %v2395_v24 }
 0x195   : > { %v788_v37 = vpop.f32.mrb[11].mxu0  ;;  %v1934_v10 = vpop.eup %1933  ;;  %v1668_v12 = vpack.c.bf16 %v1153_v1, %v1152_v0  ;;  %v1151_v13 = vmul.f32 %v1932_v6, %v2436_v51  ;;  %v1566_v44 = vmul.f32 -1.442695, %v2498_v8  ;;  %v898_v51 = vmul.f32 %v1791_v3, %v2395_v24 }
 0x196   : > { %v1936_v19 = vpop.eup %1935  ;;  %v1708_v21 = vpack.c.bf16 %v1169_v32, %v1168_v59  ;;  %v1167_v43 = vmul.f32 %v1934_v10, %v2432_v49  ;;  %1951 = vpow2.f32 %v1582_v18  ;;  %v896_v31 = vmul.f32 %v2395_v24, %v788_v37 }
 0x197   : > { %v1938_v22 = vpop.eup %1937  ;;  %1740 = vst [vmem:[%s2508_s15 + $0x8] sm:$0xff] %v1668_v12   ;;  %v1663_v38 = vpack.c.bf16 %v1151_v13, %v1150_v7  ;;  %v1060_v15 = vadd.f32 1.0, %v1936_v19  ;;  %1953 = vpow2.f32 %v1566_v44  ;;  %v2521_v39 = vadd.f32 %v2400_v16, %v911_v14 }
 0x198   : > { %v1940_v17 = vpop.eup %1939  ;;  %1748 = vst [vmem:[%s2508_s15 + $0x48] sm:$0xff] %v1708_v21   ;;  %v1703_v49 = vpack.c.bf16 %v1167_v43, %v1166_v48  ;;  %v1076_v25 = vadd.f32 1.0, %v1938_v22  ;;  %v912_v41 = vmul.f32 %v2395_v24, %v852_v4  ;;  %v2525_v46 = vadd.f32 %v2400_v16, %v898_v51 }
 0x199   : > { %v1942_v27 = vpop.eup %1941  ;;  %1664 = vst [vmem:[%s2508_s15] sm:$0xff] %v1663_v38   ;;  %1955 = vrcp.f32 %v1060_v15  ;;  %v1058_v28 = vadd.f32 1.0, %v1940_v17  ;;  %v1564_v52 = vmul.f32 -1.442695, %v2514_v26  ;;  %v2529_v53 = vadd.f32 %v2400_v16, %v914_v30 }
 0x19a   : > { %v1944_v34 = vpop.eup %1943  ;;  %1747 = vst [vmem:[%s2508_s15 + $0x40] sm:$0xff] %v1703_v49   ;;  %1957 = vrcp.f32 %v1076_v25  ;;  %v1074_v35 = vadd.f32 1.0, %v1942_v27  ;;  %v2532_v56 = vadd.f32 %v2400_v16, %v896_v31  ;;  %v2535_v57 = vadd.f32 %v2400_v16, %v912_v41 }
 0x19b   : > { %v1946_v42 = vpop.eup %1945  ;;  %1959 = vrcp.f32 %v1058_v28  ;;  %v1061_v45 = vadd.f32 1.0, %v1944_v34  ;;  %v1580_v59 = vmul.f32 -1.442695, %v2521_v39  ;;  %v1567_v60 = vmul.f32 -1.442695, %v2525_v46 }
 0x19c   : > { %v1948_v47 = vpop.eup %1947  ;;  %1961 = vrcp.f32 %v1074_v35  ;;  %v1077_v50 = vadd.f32 1.0, %v1946_v42  ;;  %v1583_v61 = vmul.f32 -1.442695, %v2529_v53  ;;  %v1565_v0 = vmul.f32 -1.442695, %v2532_v56 }
 0x19d   : > { %v1950_v54 = vpop.eup %1949  ;;  %1963 = vrcp.f32 %v1061_v45  ;;  %v1059_v55 = vadd.f32 1.0, %v1948_v47  ;;  %v1581_v1 = vmul.f32 -1.442695, %v2535_v57 }
 0x19e   : > { %1965 = vrcp.f32 %v1077_v50  ;;  %v1075_v58 = vadd.f32 1.0, %v1950_v54 }
 0x19f   : > { %1967 = vrcp.f32 %v1059_v55  ;;  %v1810_v62 = vpop.f32.mrb[12].mxu1  ;;  %v1794_v3 = vpop.f32.mrb[12].mxu0 }
 0x1a0   : > { %1969 = vrcp.f32 %v1075_v58  ;;  %v1952_v63 = vpop.eup %1951  ;;  %v917_v4 = vmul.f32 %v1810_v62, %v2395_v24  ;;  %v865_v6 = vpop.f32.mrb[13].mxu1  ;;  %v901_v9 = vmul.f32 %v1794_v3, %v2395_v24 }
 0x1a1   : > { %1971 = vpow2.f32 %v1564_v52  ;;  %v1954_v7 = vpop.eup %1953  ;;  %v1080_v32 = vadd.f32 1.0, %v1952_v63  ;;  %v801_v37 = vpop.f32.mrb[13].mxu0  ;;  %v915_v10 = vmul.f32 %v2395_v24, %v865_v6 }
 0x1a2   : > { %1973 = vpow2.f32 %v1580_v59  ;;  %v1811_v48 = vpop.f32.mrb[14].mxu1  ;;  %v1064_v13 = vadd.f32 1.0, %v1954_v7  ;;  %v2546_v18 = vadd.f32 %v2400_v16, %v917_v4  ;;  %v899_v19 = vmul.f32 %v2395_v24, %v801_v37  ;;  %v1795_v21 = vpop.f32.mrb[14].mxu0 }
 0x1a3   : > { %v1956_v12 = vpop.eup %1955  ;;  %1975 = vpow2.f32 %v1567_v60  ;;  %v868_v43 = vpop.f32.mrb[15].mxu1  ;;  %v2551_v22 = vadd.f32 %v2400_v16, %v901_v9  ;;  %v2554_v38 = vadd.f32 %v2400_v16, %v915_v10  ;;  %v902_v35 = vmul.f32 %v1795_v21, %v2395_v24 }
 0x1a4   : > { %v1958_v44 = vpop.eup %1957  ;;  %v1156_v14 = vmul.f32 %v1956_v12, %v2450_v11  ;;  %1977 = vrcp.f32 %v1080_v32  ;;  %v804_v15 = vpop.f32.mrb[15].mxu0  ;;  %v1586_v49 = vmul.f32 -1.442695, %v2546_v18  ;;  %v2559_v25 = vadd.f32 %v2400_v16, %v899_v19 }
 0x1a5   : > { %v1960_v51 = vpop.eup %1959  ;;  %v1172_v17 = vmul.f32 %v1958_v44, %v2446_v5  ;;  %1979 = vrcp.f32 %v1064_v13  ;;  %v1570_v28 = vmul.f32 -1.442695, %v2551_v22  ;;  %v1584_v30 = vmul.f32 -1.442695, %v2554_v38 }
 0x1a6   : > { %v1962_v27 = vpop.eup %1961  ;;  %v1154_v11 = vmul.f32 %v1960_v51, %v2458_v23  ;;  %1981 = vpow2.f32 %v1583_v61  ;;  %v1568_v5 = vmul.f32 -1.442695, %v2559_v25  ;;  %v918_v45 = vmul.f32 %v1811_v48, %v2395_v24 }
 0x1a7   : > { %v1964_v31 = vpop.eup %1963  ;;  %v1170_v34 = vmul.f32 %v1962_v27, %v2454_v20  ;;  %1983 = vpow2.f32 %v1565_v0  ;;  %v900_v23 = vmul.f32 %v2395_v24, %v804_v15  ;;  %v2572_v20 = vadd.f32 %v2400_v16, %v902_v35 }
 0x1a8   : > { %v1966_v41 = vpop.eup %1965  ;;  %v1157_v42 = vmul.f32 %v1964_v31, %v2467_v33  ;;  %1985 = vpow2.f32 %v1581_v1  ;;  %v916_v52 = vmul.f32 %v2395_v24, %v868_v43  ;;  %v2577_v58 = vadd.f32 %v2400_v16, %v918_v45 }
 0x1a9   : > { %v1968_v47 = vpop.eup %1967  ;;  %v1173_v50 = vmul.f32 %v1966_v41, %v2463_v29  ;;  %1987 = vpow2.f32 %v1570_v28  ;;  %v1571_v29 = vmul.f32 -1.442695, %v2572_v20  ;;  %v2585_v4 = vadd.f32 %v2400_v16, %v900_v23 }
 0x1aa   : > { %v1970_v54 = vpop.eup %1969  ;;  %v1678_v55 = vpack.c.bf16 %v1157_v42, %v1156_v14  ;;  %v1155_v33 = vmul.f32 %v1968_v47, %v2472_v36  ;;  %1989 = vpow2.f32 %v1586_v49  ;;  %v1587_v36 = vmul.f32 -1.442695, %v2577_v58 }
 0x1ab   : > { %v1972_v59 = vpop.eup %1971  ;;  %v1718_v60 = vpack.c.bf16 %v1173_v50, %v1172_v17  ;;  %v1171_v61 = vmul.f32 %v1970_v54, %v2476_v40  ;;  %1991 = vpow2.f32 %v1568_v5  ;;  %v2589_v7 = vadd.f32 %v2400_v16, %v916_v52 }
 0x1ac   : > { %v1974_v62 = vpop.eup %1973  ;;  %1742 = vst [vmem:[%s2508_s15 + $0x18] sm:$0xff] %v1678_v55   ;;  %v1673_v24 = vpack.c.bf16 %v1155_v33, %v1154_v11  ;;  %v1062_v63 = vadd.f32 1.0, %v1972_v59  ;;  %1993 = vpow2.f32 %v1584_v30  ;;  %v1569_v9 = vmul.f32 -1.442695, %v2585_v4 }
 0x1ad   : > { %v1976_v0 = vpop.eup %1975  ;;  %1750 = vst [vmem:[%s2508_s15 + $0x58] sm:$0xff] %v1718_v60   ;;  %v1713_v1 = vpack.c.bf16 %v1171_v61, %v1170_v34  ;;  %v1078_v3 = vadd.f32 1.0, %v1974_v62  ;;  %1995 = vpow2.f32 %v1571_v29  ;;  %v1585_v51 = vmul.f32 -1.442695, %v2589_v7 }
 0x1ae   : > { %v1978_v40 = vpop.eup %1977  ;;  %1741 = vst [vmem:[%s2508_s15 + $0x10] sm:$0xff] %v1673_v24   ;;  %1997 = vrcp.f32 %v1062_v63  ;;  %v1065_v6 = vadd.f32 1.0, %v1976_v0 }
 0x1af   : > { %v1980_v32 = vpop.eup %1979  ;;  %1749 = vst [vmem:[%s2508_s15 + $0x50] sm:$0xff] %v1713_v1   ;;  %1999 = vrcp.f32 %v1078_v3  ;;  %v1176_v50 = vmul.f32 %v1978_v40, %v2493_v2 }
 0x1b0   : > { %v1982_v37 = vpop.eup %1981  ;;  %2001 = vrcp.f32 %v1065_v6  ;;  %v1160_v34 = vmul.f32 %v1980_v32, %v2498_v8 }
 0x1b1   : > { %v1984_v10 = vpop.eup %1983  ;;  %v1081_v48 = vadd.f32 1.0, %v1982_v37  ;;  %2003 = vpow2.f32 %v1587_v36 }
 0x1b2   : > { %v1986_v12 = vpop.eup %1985  ;;  %v1063_v13 = vadd.f32 1.0, %v1984_v10  ;;  %2005 = vpow2.f32 %v1569_v9 }
 0x1b3   : > { %v1988_v19 = vpop.eup %1987  ;;  %2007 = vrcp.f32 %v1081_v48  ;;  %v1079_v21 = vadd.f32 1.0, %v1986_v12 }
 0x1b4   : > { %v1990_v43 = vpop.eup %1989  ;;  %2009 = vrcp.f32 %v1063_v13  ;;  %v1068_v16 = vadd.f32 1.0, %v1988_v19 }
 0x1b5   : > { %v1992_v44 = vpop.eup %1991  ;;  %2011 = vrcp.f32 %v1079_v21  ;;  %v1084_v49 = vadd.f32 1.0, %v1990_v43 }
 0x1b6   : > { %v1994_v14 = vpop.eup %1993  ;;  %2013 = vrcp.f32 %v1068_v16  ;;  %v1066_v28 = vadd.f32 1.0, %v1992_v44 }
 0x1b7   : > { %v1996_v15 = vpop.eup %1995  ;;  %v1082_v29 = vadd.f32 1.0, %v1994_v14 }
 0x1b8   : > { %v1998_v17 = vpop.eup %1997  ;;  %v1069_v27 = vadd.f32 1.0, %v1996_v15 }
 0x1b9   : > { %v2000_v11 = vpop.eup %1999 }
 0x1ba   : > { %v2002_v30 = vpop.eup %2001  ;;  %2015 = vrcp.f32 %v1069_v27  ;;  %v1174_v55 = vmul.f32 %v2000_v11, %v2521_v39 }
 0x1bb   : > { %v2004_v31 = vpop.eup %2003  ;;  %v1161_v5 = vmul.f32 %v2002_v30, %v2525_v46  ;;  %2017 = vpow2.f32 %v1585_v51  ;;  %v1158_v46 = vmul.f32 %v1998_v17, %v2514_v26 }
 0x1bc   : > { %v2006_v35 = vpop.eup %2005  ;;  %2019 = vrcp.f32 %v1084_v49  ;;  %v1085_v41 = vadd.f32 1.0, %v2004_v31 }
 0x1bd   : > { %v2008_v42 = vpop.eup %2007  ;;  %v1688_v45 = vpack.c.bf16 %v1161_v5, %v1160_v34  ;;  %2021 = vrcp.f32 %v1066_v28  ;;  %v1067_v23 = vadd.f32 1.0, %v2006_v35 }
 0x1be   : > { %v2010_v47 = vpop.eup %2009  ;;  %v1177_v52 = vmul.f32 %v2008_v42, %v2529_v53  ;;  %2023 = vrcp.f32 %v1085_v41 }
 0x1bf   : > { %v2012_v8 = vpop.eup %2011  ;;  %1744 = vst [vmem:[%s2508_s15 + $0x28] sm:$0xff] %v1688_v45   ;;  %v1159_v54 = vmul.f32 %v2010_v47, %v2532_v56  ;;  %2025 = vrcp.f32 %v1067_v23 }
 0x1c0   : > { %v1728_v33 = vpack.c.bf16 %v1177_v52, %v1176_v50  ;;  %v1175_v59 = vmul.f32 %v2012_v8, %v2535_v57  ;;  %v2014_v61 = vpop.eup %2013  ;;  %2027 = vrcp.f32 %v1082_v29 }
 0x1c1   : > { %v1683_v60 = vpack.c.bf16 %v1159_v54, %v1158_v46  ;;  %v1164_v26 = vmul.f32 %v2014_v61, %v2551_v22 }
 0x1c2   : > { %1752 = vst [vmem:[%s2508_s15 + $0x68] sm:$0xff] %v1728_v33   ;;  %v1723_v2 = vpack.c.bf16 %v1175_v59, %v1174_v55 }
 0x1c3   : > { %1743 = vst [vmem:[%s2508_s15 + $0x20] sm:$0xff] %v1683_v60  }
 0x1c4   : > { %v2016_v53 = vpop.eup %2015  ;;  %1751 = vst [vmem:[%s2508_s15 + $0x60] sm:$0xff] %v1723_v2  }
 0x1c5   : > { %v2018_v62 = vpop.eup %2017  ;;  %v1165_v56 = vmul.f32 %v2016_v53, %v2572_v20 }
 0x1c6   : > { %v2020_v24 = vpop.eup %2019  ;;  %v1083_v39 = vadd.f32 1.0, %v2018_v62 }
 0x1c7   : > { %v2022_v57 = vpop.eup %2021  ;;  %v1698_v63 = vpack.c.bf16 %v1165_v56, %v1164_v26  ;;  %v1180_v1 = vmul.f32 %v2020_v24, %v2546_v18 }
 0x1c8   : > { %v2024_v36 = vpop.eup %2023  ;;  %2029 = vrcp.f32 %v1083_v39  ;;  %v1162_v22 = vmul.f32 %v2022_v57, %v2559_v25 }
 0x1c9   : > { %v2026_v0 = vpop.eup %2025  ;;  %1746 = vst [vmem:[%s2508_s15 + $0x38] sm:$0xff] %v1698_v63   ;;  %v1181_v3 = vmul.f32 %v2024_v36, %v2577_v58 }
 0x1ca   : > { %v1163_v20 = vmul.f32 %v2026_v0, %v2585_v4  ;;  %v2028_v32 = vpop.eup %2027 }
 0x1cb   : > { %v1738_v40 = vpack.c.bf16 %v1181_v3, %v1180_v1  ;;  %v1178_v18 = vmul.f32 %v2028_v32, %v2554_v38 }
 0x1cc   : > { %v1693_v6 = vpack.c.bf16 %v1163_v20, %v1162_v22 }
 0x1cd   : > { %1754 = vst [vmem:[%s2508_s15 + $0x78] sm:$0xff] %v1738_v40  }
 0x1ce   : > { %1745 = vst [vmem:[%s2508_s15 + $0x30] sm:$0xff] %v1693_v6  }
 0x1d2   : > { %v2030_v9 = vpop.eup %2029 }
 0x1d3   : > { %v1179_v37 = vmul.f32 %v2030_v9, %v2589_v7 }
 0x1d5   : > { %v1733_v25 = vpack.c.bf16 %v1179_v37, %v1178_v18 }
 0x1d7   : > { %1753 = vst [vmem:[%s2508_s15 + $0x70] sm:$0xff] %v1733_v25  }
 0x1d8   : > { %2044 = shalt.err (!%p2041_p5)
}
 0x1d9   : > { %s2045_s10 = scalar_lea.hbm %s2622_s27, 2048  ;;  %s2049_s13 = scalar_lea.hbm %s2680_s5, 4096 }
 0x1da   : > { %p2046_p6 = scmp.ne.s32.totalorder %s2622_s27, %s2045_s10  ;;  %p2050_p10 = scmp.lt.u32.totalorder %s2622_s27, %s2680_s5 }
 0x1db   : > { %p2051_p11 = scmp.lt.u32.totalorder %s2049_s13, %s2045_s10  ;;  %p2053_p13 = scmp.lt.u32.totalorder %s2045_s10, %s2622_s27 }
 0x1dc   : > { %p2047_p7 = pnand %p2046_p6, %p2186_p4 }
 0x1dd   : > { %p2052_p12 = por %p2051_p11, %p2050_p10 }
 0x1de   : > { %p2048_p9 = pneg %p2047_p7 }
 0x1df   : > { %p2054_p0 = por %p2053_p13, %p2052_p12 }
 0x1e1   : > { %p2055_p1 = pnand %p2054_p0, %p2048_p9 }
 0x1e3   : > { %2058 = shalt.err (!%p2055_p1)
}
 0x1e4   : > { %s2114_s16 = smov 64   ;;  %s2115_s24 = smov 4  }
 0x1e5   : > { %1822 = dma.vmem_to_hbm [thread:$0]  (%p2186_p4), %s2624_s17, 2048, %s2622_s27, %s2629_s21, %s2114_s16, %s2114_s16, %s2115_s24  }
 0x1e6 PF: > { %p1829_p2 = scmp.ge.s32.totalorder %s2109_s23, 2  ;;  %s1375_s25 = sand.u32 1, %s2089_s18  }
 0x1e7   : > { %s1376_s29 = scalar_lea.sflag [#allocation3], %s1375_s25 }
 0x1e8   : > { %p1825_p3 = pnand %p1829_p2, %p2193_p8 }
 0x1ea   : > { %2084 = dma.done.wait (!%p1825_p3), %s1376_s29, 2048  }
 0x1eb   : > { %2086 = vsyncadd (!%p1825_p3), %s1376_s29, 4294965248  ;;  %s18_s23 = sadd.s32 1, %s2109_s23   ;;  %s2683_s18 = smov %s2093_s19 }
 0x1ec   : > { %p15_p5 = scmp.ge.s32.totalorder %s18_s23, 4   ;;  %s2684_s19 = smov %s2097_s20 }
 0x1ed   : > { %s2685_s20 = smov %s2199_s6  ;;  %s2686_s21 = smov %s2105_s22 }
 0x1ee   : > { %s2687_s22 = smov %s2689_s26  ;;  %17 = sbr.rel (!%p15_p5) target bundleno = 4 (0x4), region = 87 }
 0x1f5   :  { %1381 = vsyncpa [#allocation3], 1 }
 0x1f6   :  { %1383 = vsyncpa [#allocation3 + $0x1], 1 }

</bundles_post_ra>
